<compile_context>
chip_gen: v5e
topology: v5e:2x2
jax: 0.10.0
libtpu: 0.0.40
codegen_flags: <defaults>
</compile_context>

<pallas_src>
import jax
import jax.numpy as jnp
import numpy as np
from jax import lax
from jax.experimental import pallas as pl
from jax.experimental.pallas import tpu as pltpu  # noqa: F401  (TPU backend assumed)

# ----------------------------- config ---------------------------------------
B = 2            # batch
S = 8            # sequence length (power of 2)
H = 32           # hidden size
FFN = 64         # feed-forward size
VOCAB = 64       # vocab size
N_CLASSES = 3    # classifier classes (n_classes != 1 -> no sigmoid)
NPAD = 128       # lane-dense padded logits width (sliced to N_CLASSES in wrapper)
PAD_ID = 0
EPS = 1e-5
LOG2_S = 3
assert (1 << LOG2_S) == S
SCALE = 1.0 / float(np.sqrt(H))

# row offsets inside the packed (MAT_ROWS, 128) matrix slab (all multiples of 8)
R_EMB = 0                      # (VOCAB + S, H): tok_emb stacked over pos_emb
R_QKV = R_EMB + VOCAB + S      # (H, 3H)  packed [wq | wk | wv]
R_WO = R_QKV + H               # (H, H)
R_W1 = R_WO + H                # (H, FFN)
R_W2 = R_W1 + H                # (FFN, H)
R_WC1 = R_W2 + FFN             # (H, H // 2)
R_WC2 = R_WC1 + H              # (H // 2, NPAD) zero-padded past N_CLASSES
MAT_ROWS = R_WC2 + H // 2      # = 280

# row indices inside the packed (VEC_ROWS, 128) vector slab
V_BQKV, V_BO, V_LN1G, V_LN1B, V_LN2G, V_LN2B, V_B1, V_B2, V_BC1, V_BC2 = range(10)
VEC_ROWS = 16


# ----------------------------- kernel ----------------------------------------
def _layernorm(x, gamma, beta):
    # decoupled reductions: var = E[x^2] - E[x]^2 (breaks the mean->sub->square->mean chain)
    mean = jnp.mean(x, axis=-1, keepdims=True)
    mean_sq = jnp.mean(x * x, axis=-1, keepdims=True)
    var = mean_sq - mean * mean
    return (x - mean) * lax.rsqrt(var + EPS) * gamma + beta


def predictor_kernel(ids_col_ref, ids_row_ref, mat_ref, vec_ref, out_ref):
    ids_col = ids_col_ref[...]             # (B*S, 1) int32
    ids_row = ids_row_ref[...]             # (1, B*S) int32
    vec = vec_ref[...]                     # (VEC_ROWS, 128) f32: all bias/LN vectors

    # ---- fused token + position embedding lookup: ONE one-hot MXU matmul --------
    col = lax.broadcasted_iota(jnp.int32, (B * S, VOCAB + S), 1)
    row = lax.broadcasted_iota(jnp.int32, (B * S, VOCAB + S), 0)
    pos_in_seq = jnp.bitwise_and(row, S - 1)              # position within its sequence
    onehot = jnp.logical_or(col == ids_col,
                            col == VOCAB + pos_in_seq).astype(jnp.float32)   # (B*S, VOCAB+S)
    emb_table = mat_ref[pl.ds(R_EMB, VOCAB + S), pl.ds(0, H)]
    x = jnp.dot(onehot, emb_table, preferred_element_type=jnp.float32)       # (B*S, H)

    # ---- batched single-head attention (packed QKV, block-diagonal batch mask) --
    w_qkv = mat_ref[pl.ds(R_QKV, H), pl.ds(0, 3 * H)]
    qkv = jnp.dot(x, w_qkv, preferred_element_type=jnp.float32) + vec[V_BQKV:V_BQKV + 1, 0:3 * H]
    q = qkv[:, 0:H]
    k = qkv[:, H:2 * H]
    v = qkv[:, 2 * H:3 * H]

    # contract last dims directly (no explicit k.T / XLU transpose)
    scores = lax.dot_general(q, k, (((1,), (1,)), ((), ())),
                             preferred_element_type=jnp.float32) * SCALE     # (B*S, B*S)
    rb = jnp.right_shift(lax.broadcasted_iota(jnp.int32, (B * S, B * S), 0), LOG2_S)
    cb = jnp.right_shift(lax.broadcasted_iota(jnp.int32, (B * S, B * S), 1), LOG2_S)
    # mask only cross-batch entries; pad tokens still attend (matches the reference)
    scores = jnp.where(rb == cb, scores, -1e30)
    scores = scores - jnp.max(scores, axis=-1, keepdims=True)
    p = jnp.exp(scores)
    attn = p * pl.reciprocal(jnp.sum(p, axis=-1, keepdims=True), approx=True)

    ctx = jnp.dot(attn, v, preferred_element_type=jnp.float32)               # (B*S, H)
    w_o = mat_ref[pl.ds(R_WO, H), pl.ds(0, H)]
    o = jnp.dot(ctx, w_o, preferred_element_type=jnp.float32) + vec[V_BO:V_BO + 1, 0:H]

    h1 = _layernorm(x + o, vec[V_LN1G:V_LN1G + 1, 0:H], vec[V_LN1B:V_LN1B + 1, 0:H])

    w1 = mat_ref[pl.ds(R_W1, H), pl.ds(0, FFN)]
    w2 = mat_ref[pl.ds(R_W2, FFN), pl.ds(0, H)]
    ff = jnp.maximum(
        jnp.dot(h1, w1, preferred_element_type=jnp.float32) + vec[V_B1:V_B1 + 1, 0:FFN], 0.0)
    ff = jnp.dot(ff, w2, preferred_element_type=jnp.float32) + vec[V_B2:V_B2 + 1, 0:H]

    h = _layernorm(h1 + ff, vec[V_LN2G:V_LN2G + 1, 0:H], vec[V_LN2B:V_LN2B + 1, 0:H])  # (B*S, H)

    # ---- masked mean pool: pad mask folded into the (B, B*S) selection matmul ----
    rowb = lax.broadcasted_iota(jnp.int32, (B, B * S), 0)
    colb = jnp.right_shift(lax.broadcasted_iota(jnp.int32, (B, B * S), 1), LOG2_S)
    sel = jnp.logical_and(colb == rowb, ids_row != PAD_ID).astype(jnp.float32)  # (B, B*S)
    pooled_sum = jnp.dot(sel, h, preferred_element_type=jnp.float32)            # (B, H)
    cnt = jnp.sum(sel, axis=-1, keepdims=True)                                  # (B, 1)
    # NOTE: an all-padding row gives cnt == 0 -> inf/nan, matching the PyTorch reference.
    pooled = pooled_sum / cnt                                                   # exact divide

    # ---- classifier: Linear(H, H//2) -> ReLU -> Linear(H//2, n_classes) ----------
    wc1 = mat_ref[pl.ds(R_WC1, H), pl.ds(0, H // 2)]
    wc2 = mat_ref[pl.ds(R_WC2, H // 2), pl.ds(0, NPAD)]
    hcls = jnp.maximum(
        jnp.dot(pooled, wc1, preferred_element_type=jnp.float32) + vec[V_BC1:V_BC1 + 1, 0:H // 2],
        0.0)
    out_ref[...] = (
        jnp.dot(hcls, wc2, preferred_element_type=jnp.float32) + vec[V_BC2:V_BC2 + 1, 0:NPAD])


# ----------------------------- wrapper ---------------------------------------
@jax.jit
def predictor_forward(ids, mat_slab, vec_slab):
    # ids passed both as a (B*S,1) column (one-hot build) and a (1,B*S) row (pool mask);
    # together with the two packed slabs the kernel has only 4 operand streams.
    ids_col = ids.reshape(B * S, 1).astype(jnp.int32)
    ids_row = ids.reshape(1, B * S).astype(jnp.int32)
    logits_pad = pl.pallas_call(
        predictor_kernel,
        out_shape=jax.ShapeDtypeStruct((B, NPAD), jnp.float32),
        # no grid / BlockSpecs: single step, everything fully VMEM-resident (~150 KB)
    )(ids_col, ids_row, mat_slab, vec_slab)
    return logits_pad[:, :N_CLASSES]                       # (B, n_classes)


# ----------------------------- reference (plain JAX) -------------------------
def reference_forward(ids, p):
    x = p["tok_emb"][ids] + p["pos_emb"][None, :, :]
    q = x @ p["wq"] + p["bq"]
    k = x @ p["wk"] + p["bk"]
    v = x @ p["wv"] + p["bv"]
    sc = jnp.einsum("bqd,bkd->bqk", q, k) / jnp.sqrt(jnp.float32(H))
    attn = jax.nn.softmax(sc, axis=-1)
    o = jnp.einsum("bqk,bkd->bqd", attn, v) @ p["wo"] + p["bo"]

    def ln(y, g, b):
        mu = jnp.mean(y, -1, keepdims=True)
        var = jnp.mean((y - mu) ** 2, -1, keepdims=True)
        return (y - mu) / jnp.sqrt(var + EPS) * g + b

    h1 = ln(x + o, p["ln1_g"], p["ln1_b"])
    ff = jnp.maximum(h1 @ p["w1"] + p["b1"], 0.0) @ p["w2"] + p["b2"]
    emb = ln(h1 + ff, p["ln2_g"], p["ln2_b"])

    mask = (ids != PAD_ID).astype(jnp.float32)[..., None]
    pooled = (emb * mask).sum(axis=1) / mask.sum(axis=1)
    h = jnp.maximum(pooled @ p["wc1"] + p["bc1"], 0.0)
    return h @ p["wc2"] + p["bc2"]


# ----------------------------- params ----------------------------------------
def init_params(key):
    ks = jax.random.split(key, 22)
    n = lambda k, shape, s=0.05: (s * jax.random.normal(k, shape)).astype(jnp.float32)
    p = {
        "tok_emb": n(ks[0], (VOCAB, H)),
        "pos_emb": n(ks[1], (S, H)),
        "wq": n(ks[2], (H, H)), "wk": n(ks[3], (H, H)),
        "wv": n(ks[4], (H, H)), "wo": n(ks[5], (H, H)),
        "bq": n(ks[6], (H,), 0.02), "bk": n(ks[7], (H,), 0.02),
        "bv": n(ks[8], (H,), 0.02), "bo": n(ks[9], (H,), 0.02),
        "ln1_g": 1.0 + n(ks[10], (H,)), "ln1_b": n(ks[11], (H,)),
        "ln2_g": 1.0 + n(ks[12], (H,)), "ln2_b": n(ks[13], (H,)),
        "w1": n(ks[14], (H, FFN)), "b1": n(ks[15], (FFN,), 0.02),
        "w2": n(ks[16], (FFN, H)), "b2": n(ks[17], (H,), 0.02),
        "wc1": n(ks[18], (H, H // 2)), "bc1": n(ks[19], (H // 2,), 0.02),
        "wc2": n(ks[20], (H // 2, N_CLASSES)), "bc2": n(ks[21], (N_CLASSES,), 0.02),
    }
    return p


def pack_params(p):
    """Pack all weights into two lane-dense f32 slabs consumed by the kernel."""
    mat = jnp.zeros((MAT_ROWS, NPAD), jnp.float32)
    mat = mat.at[R_EMB:R_EMB + VOCAB, :H].set(p["tok_emb"])
    mat = mat.at[R_EMB + VOCAB:R_EMB + VOCAB + S, :H].set(p["pos_emb"])
    mat = mat.at[R_QKV:R_QKV + H, :3 * H].set(jnp.concatenate([p["wq"], p["wk"], p["wv"]], axis=1))
    mat = mat.at[R_WO:R_WO + H, :H].set(p["wo"])
    mat = mat.at[R_W1:R_W1 + H, :FFN].set(p["w1"])
    mat = mat.at[R_W2:R_W2 + FFN, :H].set(p["w2"])
    mat = mat.at[R_WC1:R_WC1 + H, :H // 2].set(p["wc1"])
    mat = mat.at[R_WC2:R_WC2 + H // 2, :N_CLASSES].set(p["wc2"])

    vec = jnp.zeros((VEC_ROWS, NPAD), jnp.float32)
    vec = vec.at[V_BQKV, :3 * H].set(jnp.concatenate([p["bq"], p["bk"], p["bv"]]))
    vec = vec.at[V_BO, :H].set(p["bo"])
    vec = vec.at[V_LN1G, :H].set(p["ln1_g"])
    vec = vec.at[V_LN1B, :H].set(p["ln1_b"])
    vec = vec.at[V_LN2G, :H].set(p["ln2_g"])
    vec = vec.at[V_LN2B, :H].set(p["ln2_b"])
    vec = vec.at[V_B1, :FFN].set(p["b1"])
    vec = vec.at[V_B2, :H].set(p["b2"])
    vec = vec.at[V_BC1, :H // 2].set(p["bc1"])
    vec = vec.at[V_BC2, :N_CLASSES].set(p["bc2"])
    return mat, vec


# ----------------------------- main -------------------------------------------
if __name__ == "__main__":
    key = jax.random.PRNGKey(0)
    kp, ki = jax.random.split(key)
    params = init_params(kp)
    mat_slab, vec_slab = pack_params(params)

    # deterministic input ids with some trailing padding (pad_id = 0)
    ids = jax.random.randint(ki, (B, S), 1, VOCAB, dtype=jnp.int32)
    ids = ids.at[0, 6:].set(PAD_ID)
    ids = ids.at[1, 5:].set(PAD_ID)

    out = jax.block_until_ready(predictor_forward(ids, mat_slab, vec_slab))
    ref = jax.block_until_ready(reference_forward(ids, params))

    assert out.shape == (B, N_CLASSES)
    # tolerance accounts for the EUP approximate reciprocal used for the softmax
    # denominator (the masked-mean count divide is now exact)
    np.testing.assert_allclose(np.asarray(out), np.asarray(ref), rtol=5e-3, atol=2e-3)
    print("KERNEL_OK")
</pallas_src>

<mosaic_0001>
module attributes {stable_mosaic.version = 11 : i64} {
  func.func @predictor_kernel(%arg0: memref<16x1xi32, #tpu.memory_space<vmem>>, %arg1: memref<1x16xi32, #tpu.memory_space<vmem>>, %arg2: memref<280x128xf32, #tpu.memory_space<vmem>>, %arg3: memref<16x128xf32, #tpu.memory_space<vmem>>, %arg4: memref<2x128xf32, #tpu.memory_space<vmem>>) attributes {dimension_semantics = [], scalar_prefetch = 0 : i64, scratch_operands = 0 : i64, tpu.core_type = #tpu.core_type<tc>} {
    %c0 = arith.constant 0 : index
    %c0_0 = arith.constant 0 : index
    %0 = vector.load %arg0[%c0, %c0_0] : memref<16x1xi32, #tpu.memory_space<vmem>>, vector<16x1xi32>
    %c0_1 = arith.constant 0 : index
    %c0_2 = arith.constant 0 : index
    %1 = vector.load %arg1[%c0_1, %c0_2] : memref<1x16xi32, #tpu.memory_space<vmem>>, vector<1x16xi32>
    %c0_3 = arith.constant 0 : index
    %c0_4 = arith.constant 0 : index
    %2 = vector.load %arg3[%c0_3, %c0_4] : memref<16x128xf32, #tpu.memory_space<vmem>>, vector<16x128xf32>
    %3 = tpu.iota {dimensions = array<i32: 1>} : vector<16x72xi32>
    %4 = tpu.iota {dimensions = array<i32: 0>} : vector<16x72xi32>
    %c7_i32 = arith.constant 7 : i32
    %5 = vector.broadcast %c7_i32 : i32 to vector<16x72xi32>
    %6 = arith.andi %4, %5 : vector<16x72xi32>
    %7 = vector.broadcast %0 : vector<16x1xi32> to vector<16x72xi32>
    %8 = arith.cmpi eq, %3, %7 : vector<16x72xi32>
    %c64_i32 = arith.constant 64 : i32
    %9 = vector.broadcast %c64_i32 : i32 to vector<16x72xi32>
    %10 = arith.addi %9, %6 : vector<16x72xi32>
    %11 = arith.cmpi eq, %3, %10 : vector<16x72xi32>
    %12 = arith.ori %8, %11 : vector<16x72xi1>
    %13 = arith.extui %12 : vector<16x72xi1> to vector<16x72xi32>
    %14 = arith.sitofp %13 : vector<16x72xi32> to vector<16x72xf32>
    %c0_5 = arith.constant 0 : index
    %c0_6 = arith.constant 0 : index
    %15 = vector.load %arg2[%c0_5, %c0_6] : memref<280x128xf32, #tpu.memory_space<vmem>>, vector<72x32xf32>
    %cst = arith.constant dense<0.000000e+00> : vector<16x32xf32>
    %16 = tpu.matmul %14, %15, %cst {dimension_numbers = #tpu.dot_dimension_numbers<[1], [0], [0], [1], [0, 0, 1, 1], [], []>} : vector<16x72xf32>, vector<72x32xf32>, vector<16x32xf32> -> vector<16x32xf32>
    %c72 = arith.constant 72 : index
    %c0_7 = arith.constant 0 : index
    %17 = vector.load %arg2[%c72, %c0_7] : memref<280x128xf32, #tpu.memory_space<vmem>>, vector<32x96xf32>
    %cst_8 = arith.constant dense<0.000000e+00> : vector<16x96xf32>
    %18 = tpu.matmul %16, %17, %cst_8 {dimension_numbers = #tpu.dot_dimension_numbers<[1], [0], [0], [1], [0, 0, 1, 1], [], []>} : vector<16x32xf32>, vector<32x96xf32>, vector<16x96xf32> -> vector<16x96xf32>
    %19 = vector.extract_strided_slice %2 {offsets = [0, 0], sizes = [1, 96], strides = [1, 1]} : vector<16x128xf32> to vector<1x96xf32>
    %20 = vector.broadcast %19 : vector<1x96xf32> to vector<16x96xf32>
    %21 = arith.addf %18, %20 : vector<16x96xf32>
    %22 = vector.extract_strided_slice %21 {offsets = [0, 0], sizes = [16, 32], strides = [1, 1]} : vector<16x96xf32> to vector<16x32xf32>
    %23 = vector.extract_strided_slice %21 {offsets = [0, 32], sizes = [16, 32], strides = [1, 1]} : vector<16x96xf32> to vector<16x32xf32>
    %24 = vector.extract_strided_slice %21 {offsets = [0, 64], sizes = [16, 32], strides = [1, 1]} : vector<16x96xf32> to vector<16x32xf32>
    %cst_9 = arith.constant dense<0.000000e+00> : vector<16x16xf32>
    %25 = tpu.matmul %22, %23, %cst_9 {dimension_numbers = #tpu.dot_dimension_numbers<[1], [1], [0], [0], [0, 0, 1, 0], [], []>} : vector<16x32xf32>, vector<16x32xf32>, vector<16x16xf32> -> vector<16x16xf32>
    %cst_10 = arith.constant 0.176776692 : f32
    %26 = vector.broadcast %cst_10 : f32 to vector<16x16xf32>
    %27 = arith.mulf %25, %26 : vector<16x16xf32>
    %28 = tpu.iota {dimensions = array<i32: 0>} : vector<16x16xi32>
    %c3_i32 = arith.constant 3 : i32
    %29 = vector.broadcast %c3_i32 : i32 to vector<16x16xi32>
    %30 = arith.shrsi %28, %29 : vector<16x16xi32>
    %31 = tpu.iota {dimensions = array<i32: 1>} : vector<16x16xi32>
    %c3_i32_11 = arith.constant 3 : i32
    %32 = vector.broadcast %c3_i32_11 : i32 to vector<16x16xi32>
    %33 = arith.shrsi %31, %32 : vector<16x16xi32>
    %34 = arith.cmpi eq, %30, %33 : vector<16x16xi32>
    %cst_12 = arith.constant -1.000000e+30 : f32
    %35 = vector.broadcast %cst_12 : f32 to vector<16x16xf32>
    %36 = arith.select %34, %27, %35 : vector<16x16xi1>, vector<16x16xf32>
    %cst_13 = arith.constant dense<0xFF800000> : vector<16xf32>
    %37 = vector.multi_reduction <maximumf>, %36, %cst_13 [1] : vector<16x16xf32> to vector<16xf32>
    %38 = vector.shape_cast %37 : vector<16xf32> to vector<16x1xf32>
    %39 = vector.broadcast %38 : vector<16x1xf32> to vector<16x16xf32>
    %40 = arith.subf %36, %39 : vector<16x16xf32>
    %41 = math.exp %40 : vector<16x16xf32>
    %cst_14 = arith.constant dense<0.000000e+00> : vector<16xf32>
    %42 = vector.multi_reduction <add>, %41, %cst_14 [1] : vector<16x16xf32> to vector<16xf32>
    %43 = vector.shape_cast %42 : vector<16xf32> to vector<16x1xf32>
    %44 = tpu.reciprocal %43 {approx = true} : vector<16x1xf32> -> vector<16x1xf32>
    %45 = vector.broadcast %44 : vector<16x1xf32> to vector<16x16xf32>
    %46 = arith.mulf %41, %45 : vector<16x16xf32>
    %cst_15 = arith.constant dense<0.000000e+00> : vector<16x32xf32>
    %47 = tpu.matmul %46, %24, %cst_15 {dimension_numbers = #tpu.dot_dimension_numbers<[1], [0], [0], [1], [0, 0, 1, 1], [], []>} : vector<16x16xf32>, vector<16x32xf32>, vector<16x32xf32> -> vector<16x32xf32>
    %c104 = arith.constant 104 : index
    %c0_16 = arith.constant 0 : index
    %48 = vector.load %arg2[%c104, %c0_16] : memref<280x128xf32, #tpu.memory_space<vmem>>, vector<32x32xf32>
    %cst_17 = arith.constant dense<0.000000e+00> : vector<16x32xf32>
    %49 = tpu.matmul %47, %48, %cst_17 {dimension_numbers = #tpu.dot_dimension_numbers<[1], [0], [0], [1], [0, 0, 1, 1], [], []>} : vector<16x32xf32>, vector<32x32xf32>, vector<16x32xf32> -> vector<16x32xf32>
    %50 = vector.extract_strided_slice %2 {offsets = [1, 0], sizes = [1, 32], strides = [1, 1]} : vector<16x128xf32> to vector<1x32xf32>
    %51 = vector.broadcast %50 : vector<1x32xf32> to vector<16x32xf32>
    %52 = arith.addf %49, %51 : vector<16x32xf32>
    %53 = arith.addf %16, %52 : vector<16x32xf32>
    %54 = vector.extract_strided_slice %2 {offsets = [2, 0], sizes = [1, 32], strides = [1, 1]} : vector<16x128xf32> to vector<1x32xf32>
    %55 = vector.extract_strided_slice %2 {offsets = [3, 0], sizes = [1, 32], strides = [1, 1]} : vector<16x128xf32> to vector<1x32xf32>
    %cst_18 = arith.constant dense<0.000000e+00> : vector<16xf32>
    %56 = vector.multi_reduction <add>, %53, %cst_18 [1] : vector<16x32xf32> to vector<16xf32>
    %57 = vector.shape_cast %56 : vector<16xf32> to vector<16x1xf32>
    %cst_19 = arith.constant 3.200000e+01 : f32
    %58 = vector.broadcast %cst_19 : f32 to vector<16x1xf32>
    %59 = arith.divf %57, %58 : vector<16x1xf32>
    %60 = arith.mulf %53, %53 : vector<16x32xf32>
    %cst_20 = arith.constant dense<0.000000e+00> : vector<16xf32>
    %61 = vector.multi_reduction <add>, %60, %cst_20 [1] : vector<16x32xf32> to vector<16xf32>
    %62 = vector.shape_cast %61 : vector<16xf32> to vector<16x1xf32>
    %cst_21 = arith.constant 3.200000e+01 : f32
    %63 = vector.broadcast %cst_21 : f32 to vector<16x1xf32>
    %64 = arith.divf %62, %63 : vector<16x1xf32>
    %65 = arith.mulf %59, %59 : vector<16x1xf32>
    %66 = arith.subf %64, %65 : vector<16x1xf32>
    %67 = vector.broadcast %59 : vector<16x1xf32> to vector<16x32xf32>
    %68 = arith.subf %53, %67 : vector<16x32xf32>
    %cst_22 = arith.constant 9.99999974E-6 : f32
    %69 = vector.broadcast %cst_22 : f32 to vector<16x1xf32>
    %70 = arith.addf %66, %69 : vector<16x1xf32>
    %71 = math.rsqrt %70 : vector<16x1xf32>
    %72 = vector.broadcast %71 : vector<16x1xf32> to vector<16x32xf32>
    %73 = arith.mulf %68, %72 : vector<16x32xf32>
    %74 = vector.broadcast %54 : vector<1x32xf32> to vector<16x32xf32>
    %75 = arith.mulf %73, %74 : vector<16x32xf32>
    %76 = vector.broadcast %55 : vector<1x32xf32> to vector<16x32xf32>
    %77 = arith.addf %75, %76 : vector<16x32xf32>
    %c136 = arith.constant 136 : index
    %c0_23 = arith.constant 0 : index
    %78 = vector.load %arg2[%c136, %c0_23] : memref<280x128xf32, #tpu.memory_space<vmem>>, vector<32x64xf32>
    %c168 = arith.constant 168 : index
    %c0_24 = arith.constant 0 : index
    %79 = vector.load %arg2[%c168, %c0_24] : memref<280x128xf32, #tpu.memory_space<vmem>>, vector<64x32xf32>
    %cst_25 = arith.constant dense<0.000000e+00> : vector<16x64xf32>
    %80 = tpu.matmul %77, %78, %cst_25 {dimension_numbers = #tpu.dot_dimension_numbers<[1], [0], [0], [1], [0, 0, 1, 1], [], []>} : vector<16x32xf32>, vector<32x64xf32>, vector<16x64xf32> -> vector<16x64xf32>
    %81 = vector.extract_strided_slice %2 {offsets = [6, 0], sizes = [1, 64], strides = [1, 1]} : vector<16x128xf32> to vector<1x64xf32>
    %82 = vector.broadcast %81 : vector<1x64xf32> to vector<16x64xf32>
    %83 = arith.addf %80, %82 : vector<16x64xf32>
    %cst_26 = arith.constant 0.000000e+00 : f32
    %84 = vector.broadcast %cst_26 : f32 to vector<16x64xf32>
    %85 = arith.maximumf %83, %84 : vector<16x64xf32>
    %cst_27 = arith.constant dense<0.000000e+00> : vector<16x32xf32>
    %86 = tpu.matmul %85, %79, %cst_27 {dimension_numbers = #tpu.dot_dimension_numbers<[1], [0], [0], [1], [0, 0, 1, 1], [], []>} : vector<16x64xf32>, vector<64x32xf32>, vector<16x32xf32> -> vector<16x32xf32>
    %87 = vector.extract_strided_slice %2 {offsets = [7, 0], sizes = [1, 32], strides = [1, 1]} : vector<16x128xf32> to vector<1x32xf32>
    %88 = vector.broadcast %87 : vector<1x32xf32> to vector<16x32xf32>
    %89 = arith.addf %86, %88 : vector<16x32xf32>
    %90 = arith.addf %77, %89 : vector<16x32xf32>
    %91 = vector.extract_strided_slice %2 {offsets = [4, 0], sizes = [1, 32], strides = [1, 1]} : vector<16x128xf32> to vector<1x32xf32>
    %92 = vector.extract_strided_slice %2 {offsets = [5, 0], sizes = [1, 32], strides = [1, 1]} : vector<16x128xf32> to vector<1x32xf32>
    %cst_28 = arith.constant dense<0.000000e+00> : vector<16xf32>
    %93 = vector.multi_reduction <add>, %90, %cst_28 [1] : vector<16x32xf32> to vector<16xf32>
    %94 = vector.shape_cast %93 : vector<16xf32> to vector<16x1xf32>
    %cst_29 = arith.constant 3.200000e+01 : f32
    %95 = vector.broadcast %cst_29 : f32 to vector<16x1xf32>
    %96 = arith.divf %94, %95 : vector<16x1xf32>
    %97 = arith.mulf %90, %90 : vector<16x32xf32>
    %cst_30 = arith.constant dense<0.000000e+00> : vector<16xf32>
    %98 = vector.multi_reduction <add>, %97, %cst_30 [1] : vector<16x32xf32> to vector<16xf32>
    %99 = vector.shape_cast %98 : vector<16xf32> to vector<16x1xf32>
    %cst_31 = arith.constant 3.200000e+01 : f32
    %100 = vector.broadcast %cst_31 : f32 to vector<16x1xf32>
    %101 = arith.divf %99, %100 : vector<16x1xf32>
    %102 = arith.mulf %96, %96 : vector<16x1xf32>
    %103 = arith.subf %101, %102 : vector<16x1xf32>
    %104 = vector.broadcast %96 : vector<16x1xf32> to vector<16x32xf32>
    %105 = arith.subf %90, %104 : vector<16x32xf32>
    %cst_32 = arith.constant 9.99999974E-6 : f32
    %106 = vector.broadcast %cst_32 : f32 to vector<16x1xf32>
    %107 = arith.addf %103, %106 : vector<16x1xf32>
    %108 = math.rsqrt %107 : vector<16x1xf32>
    %109 = vector.broadcast %108 : vector<16x1xf32> to vector<16x32xf32>
    %110 = arith.mulf %105, %109 : vector<16x32xf32>
    %111 = vector.broadcast %91 : vector<1x32xf32> to vector<16x32xf32>
    %112 = arith.mulf %110, %111 : vector<16x32xf32>
    %113 = vector.broadcast %92 : vector<1x32xf32> to vector<16x32xf32>
    %114 = arith.addf %112, %113 : vector<16x32xf32>
    %115 = tpu.iota {dimensions = array<i32: 0>} : vector<2x16xi32>
    %116 = tpu.iota {dimensions = array<i32: 1>} : vector<2x16xi32>
    %c3_i32_33 = arith.constant 3 : i32
    %117 = vector.broadcast %c3_i32_33 : i32 to vector<2x16xi32>
    %118 = arith.shrsi %116, %117 : vector<2x16xi32>
    %119 = arith.cmpi eq, %118, %115 : vector<2x16xi32>
    %c0_i32 = arith.constant 0 : i32
    %120 = vector.broadcast %c0_i32 : i32 to vector<1x16xi32>
    %121 = arith.cmpi ne, %1, %120 : vector<1x16xi32>
    %122 = vector.broadcast %121 : vector<1x16xi1> to vector<2x16xi1>
    %123 = arith.andi %119, %122 : vector<2x16xi1>
    %124 = arith.extui %123 : vector<2x16xi1> to vector<2x16xi32>
    %125 = arith.sitofp %124 : vector<2x16xi32> to vector<2x16xf32>
    %cst_34 = arith.constant dense<0.000000e+00> : vector<2x32xf32>
    %126 = tpu.matmul %125, %114, %cst_34 {dimension_numbers = #tpu.dot_dimension_numbers<[1], [0], [0], [1], [0, 0, 1, 1], [], []>} : vector<2x16xf32>, vector<16x32xf32>, vector<2x32xf32> -> vector<2x32xf32>
    %cst_35 = arith.constant dense<0.000000e+00> : vector<2xf32>
    %127 = vector.multi_reduction <add>, %125, %cst_35 [1] : vector<2x16xf32> to vector<2xf32>
    %128 = vector.shape_cast %127 : vector<2xf32> to vector<2x1xf32>
    %129 = vector.broadcast %128 : vector<2x1xf32> to vector<2x32xf32>
    %130 = arith.divf %126, %129 : vector<2x32xf32>
    %c232 = arith.constant 232 : index
    %c0_36 = arith.constant 0 : index
    %131 = vector.load %arg2[%c232, %c0_36] : memref<280x128xf32, #tpu.memory_space<vmem>>, vector<32x16xf32>
    %c264 = arith.constant 264 : index
    %c0_37 = arith.constant 0 : index
    %132 = vector.load %arg2[%c264, %c0_37] : memref<280x128xf32, #tpu.memory_space<vmem>>, vector<16x128xf32>
    %cst_38 = arith.constant dense<0.000000e+00> : vector<2x16xf32>
    %133 = tpu.matmul %130, %131, %cst_38 {dimension_numbers = #tpu.dot_dimension_numbers<[1], [0], [0], [1], [0, 0, 1, 1], [], []>} : vector<2x32xf32>, vector<32x16xf32>, vector<2x16xf32> -> vector<2x16xf32>
    %134 = vector.extract_strided_slice %2 {offsets = [8, 0], sizes = [1, 16], strides = [1, 1]} : vector<16x128xf32> to vector<1x16xf32>
    %135 = vector.broadcast %134 : vector<1x16xf32> to vector<2x16xf32>
    %136 = arith.addf %133, %135 : vector<2x16xf32>
    %cst_39 = arith.constant 0.000000e+00 : f32
    %137 = vector.broadcast %cst_39 : f32 to vector<2x16xf32>
    %138 = arith.maximumf %136, %137 : vector<2x16xf32>
    %cst_40 = arith.constant dense<0.000000e+00> : vector<2x128xf32>
    %139 = tpu.matmul %138, %132, %cst_40 {dimension_numbers = #tpu.dot_dimension_numbers<[1], [0], [0], [1], [0, 0, 1, 1], [], []>} : vector<2x16xf32>, vector<16x128xf32>, vector<2x128xf32> -> vector<2x128xf32>
    %140 = vector.extract_strided_slice %2 {offsets = [9, 0], sizes = [1, 128], strides = [1, 1]} : vector<16x128xf32> to vector<1x128xf32>
    %141 = vector.broadcast %140 : vector<1x128xf32> to vector<2x128xf32>
    %142 = arith.addf %139, %141 : vector<2x128xf32>
    %c0_41 = arith.constant 0 : index
    %c0_42 = arith.constant 0 : index
    %143 = vector.load %arg4[%c0_41, %c0_42] : memref<2x128xf32, #tpu.memory_space<vmem>>, vector<2x128xf32>
    tpu.vector_store %arg4[%c0_41, %c0_42], %142 {strides = array<i32>} : memref<2x128xf32, #tpu.memory_space<vmem>>, vector<2x128xf32>,
    return
  }
}

</mosaic_0001>

<bundles_post_ra>
// kernel: predictor_forward.1
= control target key start
LH: loop header
LB: loop body
LE: loop exit
PB: predicated region body
PF: predicated region fallthrough
CT: control target
= control target key end

     0   :  { %9 = vsyncpa [#allocation3], 0  ;;  %s846_s0 = inlined_call_operand.vmem [shape: s32[16,1], index: 0, kind: input, shape index: {}]   ;;  %s847_s1 = inlined_call_operand.vmem [shape: s32[1,16], index: 1, kind: input, shape index: {}]   ;;  %s848_s2 = inlined_call_operand.hbm [shape: f32[280,128], index: 2, kind: input, shape index: {}]   ;;  %s849_s3 = inlined_call_operand.vmem [shape: f32[16,128], index: 3, kind: input, shape index: {}]   ;;  %s850_s4 = inlined_call_operand.hbm [shape: f32[2,128], index: 4, kind: output, shape index: {}]  }
   0x1   :  { %10 = vsyncpa [#allocation4], 0  ;;  %s19_s17 = sshll.u32 %s848_s2, 4  ;;  %s702_s18 = smov [#allocation2]   ;;  %s20_s17 = int_to_ptr.hbm [resolvable:$true] %s19_s17 }
   0x2   :  { %s21_s19 = sshll.u32 %s702_s18, 4  ;;  %s703_s20 = smov 128   ;;  %s22_s19 = int_to_ptr.vmem [resolvable:$true] %s21_s19 }
   0x3   :  { %s704_s21 = smov 8  }
   0x4   :  { %27 = dma.hbm_to_vmem [thread:$0]  %s20_s17, 4480, %s22_s19, [#allocation3], %s703_s20, %s703_s20, %s704_s21  }
   0x5   :  { %698 = dma.done.wait [#allocation3], 4480  }
   0x6   :  { %699 = vsyncadd [#allocation3], 4294962816  ;;  %v705_v0 = vmov 0   ;;  %v34_v1 = vld [vmem:[%s846_s0] sm:$0xff]  ;;  %v71_v3 = vld [vmem:[#allocation2 + $0x38] sm:$0xff]  ;;  %v39_v15 = vlaneseq  ;;  %vm73_vm2 = vcmask 588800  }
   0x7   :  { %624 = vset.pattern.permute.xlu0 %v705_v0  ;;  %v72_v2 = vld [vmem:[#allocation2 + $0x40] sm:$0xff]  ;;  %v70_v4 = vld [vmem:[#allocation2 + $0x30] sm:$0xff]  ;;  %v69_v5 = vld [vmem:[#allocation2 + $0x28] sm:$0xff]  ;;  %v706_v23 = vmov 0.0   ;;  %vm108_vm7 = vcmask 261120   ;;  %s707_s26 = smov 96  }
   0x8   :  { %47 = vperm.xlu0 %624, %v34_v1   ;;  %87 = vmatpush.msra.mxu0 %v72_v2  ;;  %v35_v6 = vld [vmem:[%s846_s0 + $0x8] sm:$0xff]  ;;  %v68_v7 = vld [vmem:[#allocation2 + $0x20] sm:$0xff]  ;;  %v67_v8 = vld [vmem:[#allocation2 + $0x18] sm:$0xff]  ;;  %v746_v16 = vshrl.u32 %v39_v15, 7  ;;  %v40_v18 = vand.u32 127, %v39_v15  ;;  %s708_s27 = smov 64  }
   0x9   :  { %v66_v9 = vld [vmem:[#allocation2 + $0x10] sm:$0xff]  ;;  %v65_v10 = vld [vmem:[#allocation2 + $0x8] sm:$0xff]  ;;  %v64_v11 = vld [vmem:[#allocation2] sm:$0xff]  ;;  %vm184_vm9 = vcmask 130048   ;;  %s710_s5 = smov [#allocation5]   ;;  %s583_s9 = sshll.u32 %s850_s4, 4  ;;  %s584_s9 = int_to_ptr.hbm [resolvable:$true] %s583_s9 }
   0xa   :  { %88 = vmatpush.msra.mxu0 %v71_v3  ;;  %v106_v12 = vld [vmem:[#allocation2 + $0x60] sm:$0xff]  ;;  %v105_v13 = vld [vmem:[#allocation2 + $0x58] sm:$0xff]  ;;  %v104_v14 = vld [vmem:[#allocation2 + $0x50] sm:$0xff]  ;;  %v44_v17 = vand.u32 7, %v746_v16  ;;  %v43_v20 = vadd.s32 8, %v746_v16  ;;  %v177_v43 = vshra.s32 %v746_v16, 3 }
   0xb   :  { %127 = vmatpush.msra.mxu1 %v106_v12  ;;  %v103_v28 = vld [vmem:[#allocation2 + $0x48] sm:$0xff]  ;;  %v763_v32 = vld [vmem:[%s849_s3] sm:$0xff]  ;;  %v771_v44 = vshra.s32 %v40_v18, 3  ;;  %v244_v2 = vld [vmem:[#allocation2 + $0x78] sm:$0xff]  ;;  %s581_s6 = sshll.u32 %s710_s5, 4  ;;  %s582_s6 = int_to_ptr.vmem [resolvable:$true] %s581_s6 }
   0xc   :  { %89 = vmatpush.msra.mxu0 %v70_v4  ;;  %v54_v19 = vadd.s32 64, %v44_v17  ;;  %v45_v21 = vand.u32 7, %v43_v20  ;;  %v107_v33 = vperm.slane %v763_v32, 0  ;;  %v178_v49 = vshra.s32 %v43_v20, 3  ;;  %v245_v1 = vld [vmem:[#allocation2 + $0x80] sm:$0xff]  ;;  %v243_v3 = vld [vmem:[#allocation2 + $0x70] sm:$0xff] }
   0xd   :  { %128 = vmatpush.msra.mxu1 %v105_v13  ;;  %vm180_vm8 = vcmp.eq.s32.totalorder %v177_v43, %v771_v44  ;;  %v246_v13 = vperm.slane %v763_v32, 1 }
   0xe   :  { %90 = vmatpush.msra.mxu0 %v69_v5  ;;  %vm56_vm0 = vcmp.eq.s32.totalorder %v40_v18, %v54_v19  ;;  %v55_v25 = vadd.s32 64, %v45_v21  ;;  %vm181_vm10 = vcmp.eq.s32.totalorder %v178_v49, %v771_v44 }
   0xf   :  { %129 = vmatpush.msra.mxu1 %v104_v14 }
  0x10   :  { %50 = vperm.xlu0 %624, %v35_v6   ;;  %91 = vmatpush.msra.mxu0 %v68_v7  ;;  %vm57_vm4 = vcmp.eq.s32.totalorder %v40_v18, %v55_v25 }
  0x11   :  { %130 = vmatpush.msra.mxu1 %v103_v28  ;;  %v709_v28 = vmov 32.0  }
  0x12   :  { %92 = vmatpush.msra.mxu0 %v67_v8 }
  0x14   :  { %93 = vmatpush.msra.mxu0 %v66_v9 }
  0x16   :  { %94 = vmatpush.msra.mxu0 %v65_v10  ;;  %v242_v10 = vld [vmem:[#allocation2 + $0x68] sm:$0xff] }
  0x18   :  { %95 = vmatpush.msra.mxu0 %v64_v11 }
  0x7a   :  { %v48_v22 = vpop.permute.xlu0 %47 }
  0x7b   :  { %vm52_vm1 = vcmp.eq.s32.totalorder %v40_v18, %v48_v22 }
  0x7c   :  { %vm58_vm3 = vmor %vm52_vm1, %vm56_vm0 }
  0x7d   :  { %v593_v24 = vsel %vm58_vm3, 1.0, %v706_v23 }
  0x7e   :  { %595 = vmatmul.msk.f32.vlgmr.msra.gmra.mxu0 %vm73_vm2, %v593_v24 }
  0x82   :  { %v51_v26 = vpop.permute.xlu0 %50 }
  0x83   :  { %vm53_vm5 = vcmp.eq.s32.totalorder %v40_v18, %v51_v26 }
  0x84   :  { %vm59_vm6 = vmor %vm53_vm5, %vm57_vm4  ;;  %vm470_vm5 = vcmp.eq.s32.totalorder %v771_v44, %v746_v16 }
  0x85   :  { %v594_v27 = vsel %vm59_vm6, 1.0, %v706_v23 }
  0x86   :  { %596 = vmatmul.msk.f32.gmra.mxu0 %vm73_vm2, %v594_v27  ;;  %vm384_vm2 = vcmask 523264  }
  0xfb   :  { %v752_v29 = vpop.f32.mrf.mxu0 }
  0xfc   :  { %597 = vmatmul.msk.f32.vlgmr.msra.gmra.mxu1 %vm108_vm7, %v752_v29 }
 0x103   :  { %v756_v30 = vpop.f32.mrf.mxu0 }
 0x104   :  { %598 = vmatmul.msk.f32.gmra.mxu1 %vm108_vm7, %v756_v30 }
 0x179   :  { %v132_v31 = vpop.f32.mrf.mxu1 }
 0x17a   :  { %v133_v36 = vadd.f32 %v132_v31, %v107_v33 }
 0x181   :  { %v135_v34 = vpop.f32.mrf.mxu1 }
 0x182   :  { %v136_v35 = vadd.f32 %v135_v34, %v107_v33 }
 0x184   :  { %142 = vrot.lane.b32.xlu1 %v136_v35, %s707_s26  ;;  %v625_v37 = vpack.i.bf16 %v133_v36, %v136_v35 }
 0x18c   :  { %140 = vrot.lane.b32.xlu1 %v133_v36, %s707_s26 }
 0x194   :  { %626 = vrot.lane.b32.xlu1 %v625_v37, %s708_s27  ;;  %v340_v37 = vld [vmem:[#allocation2 + $0x90] sm:$0xff] }
 0x1f6   :  { %v143_v38 = vpop.permute.xlu1 %142 }
 0x1f7   :  { %599 = vmatpush.xpose.msk.msra.mxu2 %vm108_vm7, %v143_v38 }
 0x1fe   :  { %v141_v39 = vpop.permute.xlu1 %140 }
 0x1ff   :  { %600 = vmatpush.xpose.msk.msra.mxu2 %vm108_vm7, %v141_v39  ;;  %v339_v39 = vld [vmem:[#allocation2 + $0x88] sm:$0xff] }
 0x202   :  { %601 = vmatmul.msk.f32.vlgmr.msra.gmra.mxu2 %vm108_vm7, %v133_v36 }
 0x206   :  { %v627_v40 = vpop.permute.xlu1 %626 }
 0x207   :  { %v628_v41 = vunpack.i.l.bf16 %v627_v40  ;;  %v629_v42 = vunpack.i.h.bf16 %v627_v40 }
 0x209   :  { %233 = vmatpush.msra.mxu3 %v628_v41 }
 0x20a   :  { %602 = vmatmul.msk.f32.gmra.mxu2 %vm108_vm7, %v136_v35  ;;  %v342_v35 = vld [vmem:[#allocation2 + $0xa0] sm:$0xff] }
 0x20b   :  { %234 = vmatpush.msra.mxu3 %v629_v42  ;;  %370 = vmatpush.msrb.mxu1 %v342_v35  ;;  %v383_v35 = vperm.slane %v763_v32, 7 }
 0x20d   :  { %265 = vmatpush.msrb.mxu3 %v245_v1  ;;  %v346_v1 = vld [vmem:[#allocation2 + $0xc0] sm:$0xff] }
 0x20f   :  { %266 = vmatpush.msrb.mxu3 %v244_v2 }
 0x211   :  { %267 = vmatpush.msrb.mxu3 %v243_v3 }
 0x213   :  { %268 = vmatpush.msrb.mxu3 %v242_v10 }
 0x285   :  { %v169_v45 = vpop.f32.mrf.mxu2 }
 0x286   :  { %v175_v46 = vmul.f32 0.17677669, %v169_v45 }
 0x288   :  { %v182_v47 = vsel %vm180_vm8, %v175_v46, -1e+30  ;;  %vm501_vm8 = vcmask 123904  }
 0x289   :  { %v185_v48 = vsel %vm184_vm9, %v182_v47, -inf }
 0x28a   :  { %186 = vmax.xlane.f32.xlu2 %v185_v48 }
 0x28d   :  { %v172_v50 = vpop.f32.mrf.mxu2 }
 0x28e   :  { %v176_v51 = vmul.f32 0.17677669, %v172_v50 }
 0x290   :  { %v183_v52 = vsel %vm181_vm10, %v176_v51, -1e+30 }
 0x291   :  { %v188_v53 = vsel %vm184_vm9, %v183_v52, -inf }
 0x292   :  { %189 = vmax.xlane.f32.xlu2 %v188_v53  ;;  %v349_v53 = vld [vmem:[#allocation2 + $0xd8] sm:$0xff] }
 0x2fd   :  { %v187_v54 = vpop.xlane.xlu2 %186 }
 0x2fe   :  { %v191_v55 = vsub.f32 %v182_v47, %v187_v54 }
 0x300   :  { %v193_v56 = vmul.f32 1.442695, %v191_v55 }
 0x302   :  { %630 = vpow2.f32 %v193_v56 }
 0x305   :  { %v190_v57 = vpop.xlane.xlu2 %189 }
 0x306   :  { %v192_v58 = vsub.f32 %v183_v52, %v190_v57  ;;  %v350_v52 = vld [vmem:[#allocation2 + $0xe0] sm:$0xff] }
 0x307   :  { %399 = vmatpush.msrb.mxu2 %v350_v52 }
 0x308   :  { %v631_v59 = vpop.eup %630  ;;  %v195_v60 = vmul.f32 1.442695, %v192_v58  ;;  %v348_v58 = vld [vmem:[#allocation2 + $0xd0] sm:$0xff] }
 0x309   :  { %v197_v61 = vsel %vm184_vm9, %v631_v59, 0.0  ;;  %400 = vmatpush.msrb.mxu2 %v349_v53 }
 0x30a   :  { %632 = vpow2.f32 %v195_v60  ;;  %198 = vadd.xlane.f32.xlu0 %v197_v61  ;;  %v347_v61 = vld [vmem:[#allocation2 + $0xc8] sm:$0xff] }
 0x30b   :  { %401 = vmatpush.msrb.mxu2 %v348_v58 }
 0x30d   :  { %402 = vmatpush.msrb.mxu2 %v347_v61 }
 0x30f   :  { %403 = vmatpush.msrb.mxu2 %v346_v1 }
 0x310   :  { %v633_v62 = vpop.eup %632 }
 0x311   :  { %v200_v63 = vsel %vm184_vm9, %v633_v62, 0.0 }
 0x312   :  { %201 = vadd.xlane.f32.xlu2 %v200_v63 }
 0x37d   :  { %v199_v4 = vpop.xlane.xlu0 %198 }
 0x37e   :  { %634 = vrcp.f32 %v199_v4  ;;  %v333_v4 = vperm.slane %v763_v32, 2 }
 0x384   :  { %v635_v5 = vpop.eup %634 }
 0x385   :  { %v202_v6 = vpop.xlane.xlu2 %201  ;;  %v205_v7 = vmul.f32 %v635_v5, %v631_v59 }
 0x386   :  { %636 = vrcp.f32 %v202_v6 }
 0x387   :  { %603 = vmatmul.msk.f32.vlgmr.msra.gmra.mxu3 %vm184_vm9, %v205_v7  ;;  %638 = vrcp.f32 %v709_v28  ;;  %v336_v7 = vperm.slane %v763_v32, 3 }
 0x38c   :  { %v637_v8 = vpop.eup %636 }
 0x38d   :  { %v206_v9 = vmul.f32 %v637_v8, %v633_v62 }
 0x38f   :  { %604 = vmatmul.msk.f32.gmra.mxu3 %vm184_vm9, %v206_v9 }
 0x40a   :  { %v236_v11 = vpop.f32.mrf.mxu3 }
 0x40b   :  { %605 = vmatmul.msk.f32.vlgmr.msrb.gmra.mxu3 %vm108_vm7, %v236_v11 }
 0x412   :  { %v239_v12 = vpop.f32.mrf.mxu3 }
 0x413   :  { %606 = vmatmul.msk.f32.gmra.mxu3 %vm108_vm7, %v239_v12 }
 0x48e   :  { %v270_v14 = vpop.f32.mrf.mxu3 }
 0x48f   :  { %v271_v15 = vadd.f32 %v270_v14, %v246_v13 }
 0x491   :  { %v785_v17 = vadd.f32 %v271_v15, %v752_v29  ;;  %v639_v29 = vpop.eup %638 }
 0x492   :  { %v285_v31 = vmul.f32 32.0, %v639_v29  ;;  %vm289_vm11 = vweird.f32 %v639_v29 }
 0x493   :  { %v278_v18 = vsel %vm108_vm7, %v785_v17, 0.0  ;;  %v293_v19 = vmul.f32 %v785_v17, %v785_v17 }
 0x494   :  { %279 = vadd.xlane.f32.xlu1 %v278_v18  ;;  %v286_v33 = vsub.f32 1.0, %v285_v31 }
 0x495   :  { %v295_v20 = vsel %vm108_vm7, %v293_v19, 0.0 }
 0x496   :  { %v273_v21 = vpop.f32.mrf.mxu3  ;;  %296 = vadd.xlane.f32.xlu2 %v295_v20  ;;  %v287_v34 = vmul.f32 %v639_v29, %v286_v33 }
 0x497   :  { %v274_v22 = vadd.f32 %v273_v21, %v246_v13 }
 0x498   :  { %v288_v36 = vadd.f32 %v639_v29, %v287_v34 }
 0x499   :  { %v793_v24 = vadd.f32 %v274_v22, %v756_v30  ;;  %v341_v30 = vld [vmem:[#allocation2 + $0x98] sm:$0xff] }
 0x49a   :  { %371 = vmatpush.msrb.mxu1 %v341_v30  ;;  %v800_v38 = vsel %vm289_vm11, %v639_v29, %v288_v36  ;;  %v345_v22 = vld [vmem:[#allocation2 + $0xb8] sm:$0xff] }
 0x49b   :  { %v281_v25 = vsel %vm108_vm7, %v793_v24, 0.0  ;;  %v294_v26 = vmul.f32 %v793_v24, %v793_v24  ;;  %404 = vmatpush.msrb.mxu2 %v345_v22 }
 0x49c   :  { %372 = vmatpush.msrb.mxu1 %v340_v37 }
 0x49d   :  { %v298_v27 = vsel %vm108_vm7, %v294_v26, 0.0  ;;  %v343_v26 = vld [vmem:[#allocation2 + $0xa8] sm:$0xff] }
 0x49e   :  { %282 = vadd.xlane.f32.xlu2 %v281_v25  ;;  %373 = vmatpush.msrb.mxu1 %v339_v39  ;;  %v344_v25 = vld [vmem:[#allocation2 + $0xb0] sm:$0xff] }
 0x49f   :  { %405 = vmatpush.msrb.mxu2 %v344_v25 }
 0x4a1   :  { %406 = vmatpush.msrb.mxu2 %v343_v26 }
 0x4a6   :  { %299 = vadd.xlane.f32.xlu2 %v298_v27  ;;  %v351_v27 = vperm.slane %v763_v32, 6 }
 0x507   :  { %v280_v40 = vpop.xlane.xlu1 %279 }
 0x508   :  { %v291_v41 = vmul.f32 %v800_v38, %v280_v40 }
 0x509   :  { %v297_v42 = vpop.xlane.xlu2 %296 }
 0x50a   :  { %v303_v43 = vmul.f32 %v291_v41, %v291_v41  ;;  %v301_v45 = vmul.f32 %v297_v42, %v800_v38  ;;  %v307_v3 = vsub.f32 %v785_v17, %v291_v41 }
 0x50c   :  { %v305_v46 = vsub.f32 %v301_v45, %v303_v43 }
 0x50e   :  { %v309_v47 = vadd.f32 1e-05, %v305_v46 }
 0x510   :  { %640 = vrsqrt.f32 %v309_v47  ;;  %vm317_vm13 = vweird.f32 %v309_v47 }
 0x511   :  { %v283_v48 = vpop.xlane.xlu2 %282 }
 0x512   :  { %v292_v50 = vmul.f32 %v800_v38, %v283_v48 }
 0x514   :  { %v304_v56 = vmul.f32 %v292_v50, %v292_v50  ;;  %v308_v17 = vsub.f32 %v793_v24, %v292_v50 }
 0x516   :  { %v641_v49 = vpop.eup %640 }
 0x517   :  { %v312_v51 = vmul.f32 %v641_v49, %v309_v47  ;;  %vm318_vm12 = vweird.f32 %v641_v49 }
 0x518   :  { %vm319_vm14 = vmor %vm317_vm13, %vm318_vm12 }
 0x519   :  { %v313_v54 = vmul.f32 %v641_v49, %v312_v51  ;;  %v300_v55 = vpop.xlane.xlu2 %299 }
 0x51a   :  { %v302_v57 = vmul.f32 %v300_v55, %v800_v38 }
 0x51b   :  { %v314_v59 = vmul.f32 0.5, %v313_v54 }
 0x51c   :  { %v306_v60 = vsub.f32 %v302_v57, %v304_v56 }
 0x51d   :  { %v315_v62 = vsub.f32 1.5, %v314_v59 }
 0x51e   :  { %v310_v63 = vadd.f32 1e-05, %v306_v60 }
 0x51f   :  { %v316_v2 = vmul.f32 %v641_v49, %v315_v62 }
 0x520   :  { %642 = vrsqrt.f32 %v310_v63  ;;  %vm327_vm0 = vweird.f32 %v310_v63 }
 0x521   :  { %v320_v5 = vsel %vm319_vm14, %v641_v49, %v316_v2  ;;  %v36_v49 = vld [vmem:[%s847_s1] sm:$0x1] }
 0x522   :  { %v331_v6 = vmul.f32 %v320_v5, %v307_v3  ;;  %vm471_vm3 = vcmp.ne.s32.totalorder %v36_v49, 0 }
 0x523   :  { %v472_v50 = vsel %vm471_vm3, 1, %v705_v0 }
 0x524   :  { %v334_v8 = vmul.f32 %v333_v4, %v331_v6  ;;  %v473_v51 = vperm.slane %v472_v50, 0 }
 0x526   :  { %v643_v9 = vpop.eup %642  ;;  %v337_v10 = vadd.f32 %v336_v7, %v334_v8  ;;  %vm474_vm4 = vcmp.eq.s32.totalorder %v473_v51, 1 }
 0x527   :  { %v322_v11 = vmul.f32 %v643_v9, %v310_v63  ;;  %vm328_vm15 = vweird.f32 %v643_v9  ;;  %vm475_vm6 = vmand %vm470_vm5, %vm474_vm4 }
 0x528   :  { %607 = vmatmul.msk.f32.vlgmr.msrb.gmra.mxu1 %vm108_vm7, %v337_v10  ;;  %vm329_vm1 = vmor %vm327_vm0, %vm328_vm15  ;;  %v611_v52 = vsel %vm475_vm6, 1.0, %v706_v23 }
 0x529   :  { %v323_v12 = vmul.f32 %v643_v9, %v322_v11  ;;  %v502_v53 = vsel %vm501_vm8, %v611_v52, 0.0  ;;  %v464_v11 = vperm.slane %v763_v32, 4 }
 0x52b   :  { %v324_v13 = vmul.f32 0.5, %v323_v12 }
 0x52d   :  { %v325_v14 = vsub.f32 1.5, %v324_v13 }
 0x52f   :  { %v326_v15 = vmul.f32 %v643_v9, %v325_v14  ;;  %v467_v14 = vperm.slane %v763_v32, 5  ;;  %v521_v32 = vld [vmem:[#allocation2 + $0xf0] sm:$0xff] }
 0x531   :  { %v330_v18 = vsel %vm329_vm1, %v643_v9, %v326_v15 }
 0x532   :  { %v332_v19 = vmul.f32 %v330_v18, %v308_v17 }
 0x534   :  { %v335_v20 = vmul.f32 %v333_v4, %v332_v19 }
 0x536   :  { %v338_v21 = vadd.f32 %v336_v7, %v335_v20 }
 0x538   :  { %608 = vmatmul.msk.f32.gmra.mxu1 %vm108_vm7, %v338_v21 }
 0x5a5   :  { %v375_v28 = vpop.f32.mrf.mxu1 }
 0x5a6   :  { %v376_v29 = vadd.f32 %v375_v28, %v351_v27  ;;  %v522_v28 = vld [vmem:[#allocation2 + $0xf8] sm:$0xff] }
 0x5a8   :  { %v381_v31 = vmax.f32 %v376_v29, 0.0 }
 0x5aa   :  { %609 = vmatmul.msk.f32.vlgmr.msrb.gmra.mxu2 %vm384_vm2, %v381_v31  ;;  %v520_v31 = vld [vmem:[#allocation2 + $0xe8] sm:$0xff] }
 0x5b5   :  { %v378_v24 = vpop.f32.mrf.mxu1 }
 0x5b6   :  { %v379_v33 = vadd.f32 %v378_v24, %v351_v27  ;;  %v523_v27 = vld [vmem:[#allocation2 + $0x100] sm:$0xff]  ;;  %v525_v24 = vld [vmem:[#allocation2 + $0x110] sm:$0xff] }
 0x5b7   :  { %542 = vmatpush.msra.mxu3 %v523_v27  ;;  %569 = vmatpush.msra.mxu1 %v525_v24 }
 0x5b8   :  { %v382_v34 = vmax.f32 %v379_v33, 0.0 }
 0x5b9   :  { %543 = vmatpush.msra.mxu3 %v522_v28 }
 0x5ba   :  { %610 = vmatmul.msk.f32.gmra.mxu2 %vm384_vm2, %v382_v34 }
 0x5bb   :  { %544 = vmatpush.msra.mxu3 %v521_v32 }
 0x5bd   :  { %545 = vmatpush.msra.mxu3 %v520_v31 }
 0x62d   :  { %v408_v36 = vpop.f32.mrf.mxu2 }
 0x62e   :  { %v409_v30 = vadd.f32 %v408_v36, %v383_v35 }
 0x630   :  { %v814_v37 = vadd.f32 %v409_v30, %v337_v10 }
 0x632   :  { %v416_v39 = vsel %vm108_vm7, %v814_v37, 0.0  ;;  %v424_v47 = vmul.f32 %v814_v37, %v814_v37 }
 0x633   :  { %417 = vadd.xlane.f32.xlu2 %v416_v39 }
 0x634   :  { %v426_v48 = vsel %vm108_vm7, %v424_v47, 0.0  ;;  %v38_v47 = vld [vmem:[%s849_s3 + $0x8] sm:$0xff] }
 0x63d   :  { %v411_v40 = vpop.f32.mrf.mxu2 }
 0x63e   :  { %v412_v41 = vadd.f32 %v411_v40, %v383_v35 }
 0x640   :  { %v415_v42 = vadd.f32 %v412_v41, %v338_v21 }
 0x642   :  { %v419_v43 = vsel %vm108_vm7, %v415_v42, 0.0  ;;  %v425_v45 = vmul.f32 %v415_v42, %v415_v42 }
 0x643   :  { %420 = vadd.xlane.f32.xlu2 %v419_v43 }
 0x644   :  { %v429_v46 = vsel %vm108_vm7, %v425_v45, 0.0 }
 0x645   :  { %430 = vadd.xlane.f32.xlu0 %v429_v46  ;;  %v524_v46 = vld [vmem:[#allocation2 + $0x108] sm:$0xff] }
 0x646   :  { %570 = vmatpush.msra.mxu1 %v524_v46 }
 0x64b   :  { %427 = vadd.xlane.f32.xlu2 %v426_v48  ;;  %v526_v48 = vperm.slane %v38_v47, 0 }
 0x64d   :  { %503 = vadd.xlane.f32.xlu0 %v502_v53 }
 0x6a6   :  { %v418_v54 = vpop.xlane.xlu2 %417 }
 0x6a7   :  { %v422_v0 = vmul.f32 %v418_v54, %v800_v38 }
 0x6a9   :  { %v434_v16 = vmul.f32 %v422_v0, %v422_v0  ;;  %v438_v19 = vsub.f32 %v814_v37, %v422_v0 }
 0x6b6   :  { %v421_v55 = vpop.xlane.xlu2 %420 }
 0x6b7   :  { %v423_v56 = vmul.f32 %v421_v55, %v800_v38 }
 0x6b8   :  { %v431_v57 = vpop.xlane.xlu0 %430 }
 0x6b9   :  { %v435_v58 = vmul.f32 %v423_v56, %v423_v56  ;;  %v433_v59 = vmul.f32 %v431_v57, %v800_v38  ;;  %v439_v10 = vsub.f32 %v415_v42, %v423_v56 }
 0x6bb   :  { %v437_v60 = vsub.f32 %v433_v59, %v435_v58 }
 0x6bd   :  { %v441_v61 = vadd.f32 1e-05, %v437_v60 }
 0x6be   :  { %v428_v62 = vpop.xlane.xlu2 %427 }
 0x6bf   :  { %644 = vrsqrt.f32 %v441_v61  ;;  %v432_v23 = vmul.f32 %v428_v62, %v800_v38  ;;  %vm458_vm11 = vweird.f32 %v441_v61 }
 0x6c0   :  { %v504_v29 = vpop.xlane.xlu0 %503 }
 0x6c1   :  { %v436_v44 = vsub.f32 %v432_v23, %v434_v16  ;;  %vm510_vm0 = vweird.f32 %v504_v29  ;;  %v516_v30 = vand.u32 2147483648, %v504_v29  ;;  %v514_v39 = vand.u32 2147483647, %v504_v29 }
 0x6c3   :  { %v440_v63 = vadd.f32 1e-05, %v436_v44  ;;  %v517_v40 = vor.u32 1.1754944e-38, %v516_v30  ;;  %vm515_vm3 = vcmp.eq.f32.partialorder %v514_v39, 8.507059e+37 }
 0x6c5   :  { %v645_v1 = vpop.eup %644  ;;  %646 = vrsqrt.f32 %v440_v63  ;;  %vm448_vm14 = vweird.f32 %v440_v63 }
 0x6c6   :  { %v453_v2 = vmul.f32 %v645_v1, %v441_v61  ;;  %vm459_vm10 = vweird.f32 %v645_v1  ;;  %648 = vrcp.f32 %v504_v29 }
 0x6c7   :  { %vm460_vm12 = vmor %vm458_vm11, %vm459_vm10 }
 0x6c8   :  { %v454_v3 = vmul.f32 %v645_v1, %v453_v2 }
 0x6ca   :  { %v455_v4 = vmul.f32 0.5, %v454_v3 }
 0x6cb   :  { %v647_v5 = vpop.eup %646 }
 0x6cc   :  { %v456_v6 = vsub.f32 1.5, %v455_v4  ;;  %v443_v7 = vmul.f32 %v647_v5, %v440_v63  ;;  %vm449_vm13 = vweird.f32 %v647_v5  ;;  %v649_v33 = vpop.eup %648 }
 0x6cd   :  { %vm450_vm15 = vmor %vm448_vm14, %vm449_vm13  ;;  %v506_v34 = vmul.f32 %v649_v33, %v504_v29  ;;  %vm511_vm1 = vweird.f32 %v649_v33 }
 0x6ce   :  { %v444_v8 = vmul.f32 %v647_v5, %v443_v7  ;;  %v457_v9 = vmul.f32 %v645_v1, %v456_v6  ;;  %vm512_vm2 = vmor %vm510_vm0, %vm511_vm1 }
 0x6cf   :  { %v507_v35 = vsub.f32 1.0, %v506_v34 }
 0x6d0   :  { %v445_v12 = vmul.f32 0.5, %v444_v8  ;;  %v461_v38 = vsel %vm460_vm12, %v645_v1, %v457_v9 }
 0x6d1   :  { %v463_v13 = vmul.f32 %v461_v38, %v439_v10  ;;  %v508_v36 = vmul.f32 %v649_v33, %v507_v35 }
 0x6d2   :  { %v446_v15 = vsub.f32 1.5, %v445_v12 }
 0x6d3   :  { %v466_v17 = vmul.f32 %v464_v11, %v463_v13  ;;  %v509_v37 = vadd.f32 %v649_v33, %v508_v36 }
 0x6d4   :  { %v447_v18 = vmul.f32 %v647_v5, %v446_v15 }
 0x6d5   :  { %v469_v20 = vadd.f32 %v467_v14, %v466_v17  ;;  %v513_v41 = vsel %vm512_vm2, %v649_v33, %v509_v37 }
 0x6d6   :  { %v451_v21 = vsel %vm450_vm15, %v647_v5, %v447_v18  ;;  %v518_v43 = vsel %vm515_vm3, %v517_v40, %v513_v41 }
 0x6d7   :  { %495 = vmatpush.msrb.mxu0 %v469_v20  ;;  %v462_v22 = vmul.f32 %v451_v21, %v438_v19 }
 0x6d9   :  { %v465_v25 = vmul.f32 %v464_v11, %v462_v22 }
 0x6db   :  { %v468_v26 = vadd.f32 %v467_v14, %v465_v25 }
 0x6dd   :  { %496 = vmatpush.msrb.mxu0 %v468_v26 }
 0x6de   :  { %612 = vmatmul.msk.f32.vlgmr.msrb.gmra.mxu0 %vm184_vm9, %v611_v52  ;;  %v551_v52 = vperm.slane %v38_v47, 1 }
 0x75b   :  { %v498_v42 = vpop.f32.mrf.mxu0 }
 0x75c   :  { %v519_v45 = vmul.f32 %v518_v43, %v498_v42 }
 0x75e   :  { %613 = vmatmul.msk.f32.vlgmr.msra.gmra.mxu3 %vm108_vm7, %v519_v45 }
 0x7e1   :  { %v547_v49 = vpop.f32.mrf.mxu3 }
 0x7e2   :  { %v548_v50 = vadd.f32 %v547_v49, %v526_v48 }
 0x7e4   :  { %v550_v51 = vmax.f32 %v548_v50, 0.0 }
 0x7e6   :  { %614 = vmatmul.msk.f32.vlgmr.msra.gmra.mxu1 %vm184_vm9, %v550_v51 }
 0x863   :  { %v572_v53 = vpop.f32.mrf.mxu1 }
 0x864   :  { %v573_v54 = vadd.f32 %v572_v53, %v551_v52 }
 0x866   :  { %575 = vst [vmem:[#allocation5] sm:$0x3] %v573_v54 }
 0x867   :  { %586 = dma.vmem_to_hbm [thread:$0]  %s582_s6, 32, %s584_s9, [#allocation4]  }
 0x868   :  { %700 = dma.done.wait [#allocation4], 32  }
 0x869   :  { %701 = vsyncadd [#allocation4], 4294967264 }
 0x86a   :  { %591 = vsyncpa [#allocation3], 1 }
 0x86b   :  { %592 = vsyncpa [#allocation4], 1 }

</bundles_post_ra>
